<compile_context>
chip_gen: v7x
topology: tpu7x:2x2x1
jax: 0.10.0
libtpu: 0.0.40
codegen_flags: <defaults>
</compile_context>

<pallas_src>
import jax
import jax.numpy as jnp
from jax.experimental import pallas as pl
from jax.experimental.pallas import tpu as pltpu


def _round_up(x, m):
    return ((x + m - 1) // m) * m


# -----------------------------------------------------------------------------
# Kernels
# -----------------------------------------------------------------------------
def _linear_kernel(x_ref, w_ref, b_ref, o_ref):
    """Single-K-step: y_tile = x_tile @ W + b (W, b VMEM-resident across grid)."""
    acc = jnp.dot(x_ref[...], w_ref[...], preferred_element_type=jnp.float32)
    o_ref[...] = (acc + b_ref[...]).astype(o_ref.dtype)


def _linear_kernel_ktiled(x_ref, w_ref, b_ref, o_ref, acc_ref):
    """K-tiled: accumulate partial products in f32 scratch, finalize on last k."""
    k = pl.program_id(1)

    @pl.when(k == 0)
    def _():
        acc_ref[...] = jnp.zeros_like(acc_ref)

    acc_ref[...] += jnp.dot(x_ref[...], w_ref[...],
                            preferred_element_type=jnp.float32)

    @pl.when(k == pl.num_programs(1) - 1)
    def _():
        o_ref[...] = (acc_ref[...] + b_ref[...]).astype(o_ref.dtype)


# -----------------------------------------------------------------------------
# Parameter prep (done once, at init time -- hoisted out of the forward path)
# -----------------------------------------------------------------------------
def prepare_classifier_params(weight, bias, *, compute_dtype=jnp.bfloat16):
    """Pad the class axis to a lane-dense multiple of 128 and cast the weight.

    weight : (in_dim, num_classes)  -- stored so that y = x @ weight + bias
    bias   : (num_classes,)
    Returns (w_pad, b_pad, num_classes); w_pad in compute_dtype, b_pad in f32.
    """
    in_dim, num_classes = weight.shape
    n_pad = _round_up(max(num_classes, 128), 128)
    w_pad = (jnp.zeros((in_dim, n_pad), compute_dtype)
             .at[:, :num_classes].set(weight.astype(compute_dtype)))
    b_pad = (jnp.zeros((1, n_pad), jnp.float32)
             .at[0, :num_classes].set(bias.astype(jnp.float32)))
    return w_pad, b_pad, num_classes


# -----------------------------------------------------------------------------
# Forward
# -----------------------------------------------------------------------------
def classifier_forward(x, w_pad, b_pad, num_classes, *,
                       block_rows=1024, block_k=None,
                       compute_dtype=jnp.bfloat16):
    """Pallas equivalent of nn.Linear on x's last axis, using padded params."""
    in_dim, n_pad = w_pad.shape
    assert x.shape[-1] == in_dim
    lead_shape = x.shape[:-1]
    out_dtype = x.dtype

    x2d = x.reshape(-1, in_dim)
    B = x2d.shape[0]
    if x2d.dtype != compute_dtype:
        # Halves streamed-x HBM bytes; fuses into the upstream producer under jit.
        x2d = x2d.astype(compute_dtype)

    # ---- Row (batch) tiling: 8-aligned, ragged last tile (no jnp.pad copy) ----
    if block_rows >= B:
        tb = B                      # single full-height block (full dim, no align)
    else:
        tb = max(8, (block_rows // 8) * 8)
        # Give v7x's two TensorCores several tiles each on large batches.
        while tb > 256 and pl.cdiv(B, tb) < 4:
            tb = max(256, ((tb // 2) // 8) * 8)
    nb = pl.cdiv(B, tb)

    # ---- K (in_dim) tiling: only when the resident weight won't fit VMEM ------
    if block_k is None or block_k >= in_dim:
        bk = in_dim
    else:
        assert block_k % 128 == 0 and in_dim % block_k == 0, (
            "block_k must be a multiple of 128 that divides in_dim")
        bk = block_k
    nk = in_dim // bk

    # ---- VMEM budget / compiler params ----------------------------------------
    vmem_need = (2 * tb * bk * jnp.dtype(compute_dtype).itemsize       # x (2-buf)
                 + 2 * bk * n_pad * w_pad.dtype.itemsize               # weight
                 + 2 * tb * n_pad * jnp.dtype(out_dtype).itemsize      # out (2-buf)
                 + (tb * n_pad * 4 if nk > 1 else 0)                   # f32 acc
                 + 2 * n_pad * 4)                                      # bias
    cp_extra = {}
    if vmem_need > (16 << 20):      # above v5e's 16 MiB scoped-VMEM default
        cp_extra["vmem_limit_bytes"] = min(int(vmem_need * 1.25), 64 << 20)
    # NOTE: on v7x (64 MiB VMEM), the grid-invariant weight/bias specs could be
    # single-buffered (pipeline_mode=pl.Buffered(1)) to reclaim the duplicate
    # buffer; K-tiling via block_k covers the same need portably.

    if nk == 1:
        grid = (nb,)
        in_specs = [
            pl.BlockSpec((tb, in_dim), lambda i: (i, 0)),       # streamed x rows
            pl.BlockSpec((in_dim, n_pad), lambda i: (0, 0)),    # resident weight
            pl.BlockSpec((1, n_pad), lambda i: (0, 0)),         # resident bias
        ]
        out_specs = pl.BlockSpec((tb, n_pad), lambda i: (i, 0))
        kernel = _linear_kernel
        scratch_shapes = []
        dims = ("parallel",)
    else:
        grid = (nb, nk)
        in_specs = [
            pl.BlockSpec((tb, bk), lambda i, k: (i, k)),
            pl.BlockSpec((bk, n_pad), lambda i, k: (k, 0)),
            pl.BlockSpec((1, n_pad), lambda i, k: (0, 0)),
        ]
        out_specs = pl.BlockSpec((tb, n_pad), lambda i, k: (i, 0))
        kernel = _linear_kernel_ktiled
        scratch_shapes = [pltpu.VMEM((tb, n_pad), jnp.float32)]
        dims = ("parallel", "arbitrary")

    out = pl.pallas_call(
        kernel,
        out_shape=jax.ShapeDtypeStruct((B, n_pad), out_dtype),
        grid=grid,
        in_specs=in_specs,
        out_specs=out_specs,
        scratch_shapes=scratch_shapes,
        compiler_params=pltpu.CompilerParams(
            dimension_semantics=dims, **cp_extra),
    )(x2d, w_pad, b_pad)

    # Strip class padding, restore leading dims.
    return out[:, :num_classes].reshape(*lead_shape, num_classes)


if __name__ == "__main__":
    key = jax.random.PRNGKey(0)
    k1, k2, k3, k4, k5, k6 = jax.random.split(key, 6)

    # ---- Test 1: spec shape (in_dim=3, num_classes=10), features-last ----------
    in_dim, num_classes = 3, 10
    bound = 1.0 / jnp.sqrt(jnp.float32(in_dim))
    weight = jax.random.uniform(k1, (in_dim, num_classes), jnp.float32, -bound, bound)
    bias = jax.random.uniform(k2, (num_classes,), jnp.float32, -bound, bound)
    x = jax.random.uniform(k3, (2, 32, 32, in_dim), jnp.float32)  # B = 2048 rows

    w_pad, b_pad, nc = prepare_classifier_params(weight, bias)
    y = classifier_forward(x, w_pad, b_pad, nc)
    jax.block_until_ready(y)
    assert y.shape == (2, 32, 32, num_classes)
    # Reference using the same bf16-rounded inputs with f32 accumulation.
    y_ref = (x.astype(jnp.bfloat16).astype(jnp.float32)
             @ weight.astype(jnp.bfloat16).astype(jnp.float32) + bias)
    assert jnp.allclose(y, y_ref, atol=1e-2, rtol=1e-2), \
        float(jnp.max(jnp.abs(y - y_ref)))

    # ---- Test 2: K-tiled path + ragged row tile (in_dim=256, B=100) ------------
    in_dim2, num_classes2 = 256, 17
    bound2 = 1.0 / jnp.sqrt(jnp.float32(in_dim2))
    weight2 = jax.random.uniform(k4, (in_dim2, num_classes2), jnp.float32, -bound2, bound2)
    bias2 = jax.random.uniform(k5, (num_classes2,), jnp.float32, -bound2, bound2)
    x2 = jax.random.uniform(k6, (100, in_dim2), jnp.float32)

    w_pad2, b_pad2, nc2 = prepare_classifier_params(weight2, bias2)
    y2 = classifier_forward(x2, w_pad2, b_pad2, nc2, block_rows=48, block_k=128)
    jax.block_until_ready(y2)
    assert y2.shape == (100, num_classes2)
    y2_ref = (x2.astype(jnp.bfloat16).astype(jnp.float32)
              @ weight2.astype(jnp.bfloat16).astype(jnp.float32) + bias2)
    assert jnp.allclose(y2, y2_ref, atol=1e-2, rtol=1e-2), \
        float(jnp.max(jnp.abs(y2 - y2_ref)))

    print("KERNEL_OK")
</pallas_src>

<mosaic_0001>
module attributes {stable_mosaic.version = 11 : i64} {
  func.func @_linear_kernel(%arg0: i32, %arg1: memref<512x3xbf16, #tpu.memory_space<vmem>>, %arg2: memref<3x128xbf16, #tpu.memory_space<vmem>>, %arg3: memref<1x128xf32, #tpu.memory_space<vmem>>, %arg4: memref<512x128xf32, #tpu.memory_space<vmem>>) attributes {dimension_semantics = [#tpu.dimension_semantics<parallel>], iteration_bounds = array<i64: 4>, scalar_prefetch = 0 : i64, scratch_operands = 0 : i64, tpu.core_type = #tpu.core_type<tc>, window_params = [{transform_indices = @transform_0, window_bounds = array<i64: 512, 3>}, {pipeline_mode = #tpu.pipeline_mode<synchronous>, transform_indices = @transform_1, window_bounds = array<i64: 3, 128>}, {pipeline_mode = #tpu.pipeline_mode<synchronous>, transform_indices = @transform_2, window_bounds = array<i64: 1, 128>}, {transform_indices = @transform_3, window_bounds = array<i64: 512, 128>}]} {
    %c0 = arith.constant 0 : index
    %c0_0 = arith.constant 0 : index
    %0 = vector.load %arg1[%c0, %c0_0] : memref<512x3xbf16, #tpu.memory_space<vmem>>, vector<512x3xbf16>
    %c0_1 = arith.constant 0 : index
    %c0_2 = arith.constant 0 : index
    %1 = vector.load %arg2[%c0_1, %c0_2] : memref<3x128xbf16, #tpu.memory_space<vmem>>, vector<3x128xbf16>
    %cst = arith.constant dense<0.000000e+00> : vector<512x128xf32>
    %2 = tpu.matmul %0, %1, %cst {dimension_numbers = #tpu.dot_dimension_numbers<[1], [0], [0], [1], [0, 0, 1, 1], [], []>} : vector<512x3xbf16>, vector<3x128xbf16>, vector<512x128xf32> -> vector<512x128xf32>
    %c0_3 = arith.constant 0 : index
    %c0_4 = arith.constant 0 : index
    %3 = vector.load %arg3[%c0_3, %c0_4] : memref<1x128xf32, #tpu.memory_space<vmem>>, vector<1x128xf32>
    %4 = vector.broadcast %3 : vector<1x128xf32> to vector<512x128xf32>
    %5 = arith.addf %2, %4 : vector<512x128xf32>
    %c0_5 = arith.constant 0 : index
    %c0_6 = arith.constant 0 : index
    %6 = vector.load %arg4[%c0_5, %c0_6] : memref<512x128xf32, #tpu.memory_space<vmem>>, vector<512x128xf32>
    tpu.vector_store %arg4[%c0_5, %c0_6], %5 {strides = array<i32>} : memref<512x128xf32, #tpu.memory_space<vmem>>, vector<512x128xf32>,
    return
  }
  func.func @transform_0(%arg0: i32) -> (i32, i32) {
    %c0_i32 = arith.constant 0 : i32
    %c0_i32_0 = arith.constant 0 : i32
    return %arg0, %c0_i32 : i32, i32
  }
  func.func @transform_1(%arg0: i32) -> (i32, i32) {
    %c0_i32 = arith.constant 0 : i32
    %c0_i32_0 = arith.constant 0 : i32
    %c0_i32_1 = arith.constant 0 : i32
    return %c0_i32, %c0_i32_0 : i32, i32
  }
  func.func @transform_2(%arg0: i32) -> (i32, i32) {
    %c0_i32 = arith.constant 0 : i32
    %c0_i32_0 = arith.constant 0 : i32
    %c0_i32_1 = arith.constant 0 : i32
    return %c0_i32, %c0_i32_0 : i32, i32
  }
  func.func @transform_3(%arg0: i32) -> (i32, i32) {
    %c0_i32 = arith.constant 0 : i32
    %c0_i32_0 = arith.constant 0 : i32
    return %arg0, %c0_i32 : i32, i32
  }
}

</mosaic_0001>

<bundles_post_ra>
// kernel: tpu_custom_call.1
= control target key start
LH: loop header
LB: loop body
LE: loop exit
PB: predicated region body
PF: predicated region fallthrough
CT: control target
= control target key end

     0   :  { %8 = vsyncpa [#allocation3], 0  ;;  %s1590_s0 = inlined_call_operand.vmem [shape: bf16[2048,3], index: 0, kind: input, shape index: {}]   ;;  %s1591_s1 = inlined_call_operand.vmem [shape: bf16[3,128], index: 1, kind: input, shape index: {}]   ;;  %s1592_s2 = inlined_call_operand.vmem [shape: f32[1,128], index: 2, kind: input, shape index: {}]   ;;  %s1593_s3 = inlined_call_operand.hbm [shape: f32[2048,128], index: 3, kind: output, shape index: {}]  }
   0x1   :  { %10 = vsyncpa [#allocation3 + $0x1], 0  ;;  %s1279_s12 = smov 0   ;;  %s1281_s13 = smov 0  }
   0x2   :  { %s1283_s14 = smov 0   ;;  %s1285_s15 = smov 0  }
   0x3 LB: > { %s1300_s16 = sadd.s32 4294967295, %s1253_s15   ;;  %s938_s17 = sadd.s32 4294967294, %s1253_s15   ;;  %s1253_s15 = sphi %s1285_s15, %s1599_s15   ;;  %s1249_s14 = sphi %s1283_s14, %s1598_s14   ;;  %s1245_s13 = sphi %s1281_s13, %s1597_s13   ;;  %s1241_s12 = sphi %s1279_s12, %s1596_s12  }
   0x4   : > { %s1304_s18 = sadd.s32 1, %s1253_s15   ;;  %s91_s19 = sadd.s32 1, %s1249_s14 }
   0x5   : > { %s88_s20 = ssub.s32 %s1253_s15, %s1304_s18  ;;  %p101_p0 = scmp.ne.s32.totalorder %s1249_s14, %s1245_s13 }
   0x6   : > { %p89_p1 = scmp.eq.s32.totalorder %s88_s20, 0  ;;  %p102_p2 = scmp.eq.s32.totalorder %s1300_s16, 3 }
   0x7   : > { %p107_p3 = scmp.ne.s32.totalorder %s1245_s13, %s1241_s12  ;;  %p108_p4 = scmp.eq.s32.totalorder %s938_s17, 3 }
   0x8   : > { %s1315_s21 = scalar_select %p89_p1, %s1249_s14, %s91_s19  }
   0x9   : > { %p1317_p5 = por %p102_p2, %p101_p0  ;;  %p1321_p6 = por %p108_p4, %p107_p3 }
   0xa   : > { %p941_p7 = scmp.ge.s32.totalorder %s1253_s15, 1  ;;  %p141_p8 = scmp.lt.s32.totalorder %s1253_s15, 5 }
   0xc   : > { %p142_p9 = pnand %p941_p7, %p141_p8 }
   0xd   : > { %v237_v0 = vld [vmem:[%s1591_s1] sm:$0x3] (!%p142_p9)  ;;  %vm502_vm0 = vcmask (!%p142_p9), 1040384   ;;  %vm503_vm1 = vcmask (!%p142_p9), 1041408   ;;  %s943_s26 = sshll.u32 (!%p142_p9), %s1300_s16, 6  ;;  %v1255_v1 = vmov (!%p142_p9), 65535  }
   0xe   : > { %145 = sbr.rel (%p142_p9) target bundleno = 315 (0x13b), region = 32  ;;  %v504_v2 = vsel (!%p142_p9), %vm502_vm0, 4294967295, %v1255_v1  ;;  %p166_p10 = scmp.lt.s32.totalorder (!%p142_p9), %s943_s26, 255  ;;  %vm405_vm2 = vcmask (!%p142_p9), 23552   ;;  %v1406_v37 = vld [vmem:[%s1592_s2] ss:$0 sm:$0xff] (!%p142_p9) }
   0xf   : > { %v505_v3 = vsel (!%p142_p9), %vm503_vm1, %v504_v2, 0  ;;  %s162_s4 = sand.u32 (!%p142_p9), 1, %s1245_s13   ;;  %s1015_s9 = sshll.u32 (!%p142_p9), %s1300_s16, 13 }
  0x10   : > { %v507_v4 = vand.u32 (!%p142_p9), %v505_v3, %v237_v0  ;;  %s942_s5 = sshll.u32 (!%p142_p9), %s162_s4, 9  ;;  %s1537_s17 = scalar_lea.hbm (!%p142_p9), %s1593_s3, %s1015_s9 }
  0x11   : > { %s1411_s8 = scalar_lea.vmem (!%p142_p9), [#allocation2], %s942_s5  ;;  %s1549_s19 = scalar_lea.sflag (!%p142_p9), [#allocation3], %s162_s4 }
  0x12   : > { %1049 = vmatprep.subr.bf16.mxu0 (!%p142_p9), %v507_v4  ;;  %1115 = vmatprep.subr.bf16.mxu1 (!%p142_p9), %v507_v4  ;;  %s876_s10 = sshll.u32 (!%p142_p9), %s1411_s8, 4  ;;  %s1256_s24 = smov (!%p142_p9), [#allocation2]   ;;  %s1539_s10 = int_to_ptr.vmem [resolvable:$true] %s876_s10 }
  0x13   : > { %1050 = vmatpush3.bf16.msra.mxu0 (!%p142_p9), %v507_v4  ;;  %1116 = vmatpush3.bf16.msra.mxu1 (!%p142_p9), %v507_v4  ;;  %s1191_s20 = scalar_lea.vmem (!%p142_p9), %s1539_s10, 8192  ;;  %s1195_s25 = sshll.u32 (!%p142_p9), %s1256_s24, 4  ;;  %s1196_s25 = int_to_ptr.vmem [resolvable:$false] %s1195_s25 }
  0x14   : > { %p1192_p11 = scmp.ne.s32.totalorder (!%p142_p9), %s1539_s10, %s1191_s20  ;;  %p1198_p0 = scmp.lt.s32.totalorder (!%p142_p9), %s1539_s10, %s1196_s25 }
  0x15   : > { %s1601_s26 = smov (!%p166_p10, %s943_s26), 255 }
  0x16   : > { %s944_s27 = sshll.u32 %s1601_s26, 2  ;;  %p1193_p12 = pnand %p1192_p11, %p1317_p5 }
  0x17   : > { %s1334_s30 = scalar_lea.vmem %s1590_s0, %s944_s27  ;;  %s1197_s26 = scalar_lea.vmem %s1196_s25, 16384 }
  0x18   : > { %v1159_v5 = vld [vmem:[%s1334_s30] sm:$0xff]   ;;  %v1161_v7 = vld [vmem:[%s1334_s30 + $0x8] sm:$0xff]   ;;  %v1163_v9 = vld [vmem:[%s1334_s30 + $0x10] sm:$0xff]   ;;  %p1194_p13 = pneg %p1193_p12  ;;  %p1199_p1 = scmp.lt.s32.totalorder %s1197_s26, %s1191_s20 }
  0x19   : > { %v1160_v6 = vld [vmem:[%s1334_s30 + $0x80] sm:$0xff]   ;;  %1051 = vmatprep.mubr.msk.bf16.mxu0 %vm405_vm2, %v1159_v5  ;;  %v1162_v8 = vld [vmem:[%s1334_s30 + $0x88] sm:$0xff]   ;;  %v1164_v10 = vld [vmem:[%s1334_s30 + $0x90] sm:$0xff]  }
  0x1a   : > { %1083 = vmatprep.mubr.msk.bf16.mxu1 %vm405_vm2, %v1160_v6  ;;  %1052 = vmatmul.mubr.msk.bf16.vlgmr.msra.gmra.mrb[0].mxu0 %vm405_vm2, %v1161_v7  ;;  %v1165_v11 = vld [vmem:[%s1334_s30 + $0x18] sm:$0xff]   ;;  %v1167_v13 = vld [vmem:[%s1334_s30 + $0x20] sm:$0xff]   ;;  %v1169_v15 = vld [vmem:[%s1334_s30 + $0x28] sm:$0xff]   ;;  %p1200_p2 = por %p1199_p1, %p1198_p0 }
  0x1b   : > { %1084 = vmatmul.mubr.msk.bf16.vlgmr.msra.gmra.mrb[0].mxu1 %vm405_vm2, %v1162_v8  ;;  %1055 = vmatprep.mubr.msk.bf16.mxu0 %vm405_vm2, %v1163_v9  ;;  %v1166_v12 = vld [vmem:[%s1334_s30 + $0x98] sm:$0xff]   ;;  %v1168_v14 = vld [vmem:[%s1334_s30 + $0xa0] sm:$0xff]   ;;  %v1170_v16 = vld [vmem:[%s1334_s30 + $0xa8] sm:$0xff]  }
  0x1c   : > { %1087 = vmatprep.mubr.msk.bf16.mxu1 %vm405_vm2, %v1164_v10  ;;  %v1171_v17 = vld [vmem:[%s1334_s30 + $0x30] sm:$0xff]   ;;  %v1173_v19 = vld [vmem:[%s1334_s30 + $0x38] sm:$0xff]   ;;  %v1175_v21 = vld [vmem:[%s1334_s30 + $0x40] sm:$0xff]   ;;  %p1201_p3 = pnand %p1200_p2, %p1194_p13 }
  0x1d   : > { %v1172_v18 = vld [vmem:[%s1334_s30 + $0xb0] sm:$0xff]   ;;  %v1174_v20 = vld [vmem:[%s1334_s30 + $0xb8] sm:$0xff]   ;;  %v1176_v22 = vld [vmem:[%s1334_s30 + $0xc0] sm:$0xff]  }
  0x1e   : > { %v1177_v23 = vld [vmem:[%s1334_s30 + $0x48] sm:$0xff]   ;;  %v1179_v25 = vld [vmem:[%s1334_s30 + $0x50] sm:$0xff]   ;;  %v1181_v27 = vld [vmem:[%s1334_s30 + $0x58] sm:$0xff]  }
  0x1f   : > { %v1178_v24 = vld [vmem:[%s1334_s30 + $0xc8] sm:$0xff]   ;;  %v1180_v26 = vld [vmem:[%s1334_s30 + $0xd0] sm:$0xff]   ;;  %v1182_v28 = vld [vmem:[%s1334_s30 + $0xd8] sm:$0xff]  }
  0x20   : > { %v1183_v29 = vld [vmem:[%s1334_s30 + $0x60] sm:$0xff]   ;;  %v1185_v31 = vld [vmem:[%s1334_s30 + $0x68] sm:$0xff]   ;;  %v1187_v33 = vld [vmem:[%s1334_s30 + $0x70] sm:$0xff]  }
  0x21   : > { %v1184_v30 = vld [vmem:[%s1334_s30 + $0xe0] sm:$0xff]   ;;  %v1186_v32 = vld [vmem:[%s1334_s30 + $0xe8] sm:$0xff]   ;;  %v1188_v34 = vld [vmem:[%s1334_s30 + $0xf0] sm:$0xff]  }
  0x22   : > { %1056 = vmatmul.mubr.msk.bf16.gmra.mrb[4].mxu0 %vm405_vm2, %v1165_v11  ;;  %v1189_v35 = vld [vmem:[%s1334_s30 + $0x78] sm:$0xff]  }
  0x23   : > { %1088 = vmatmul.mubr.msk.bf16.gmra.mrb[4].mxu1 %vm405_vm2, %v1166_v12  ;;  %1059 = vmatprep.mubr.msk.bf16.mxu0 %vm405_vm2, %v1167_v13  ;;  %v1190_v36 = vld [vmem:[%s1334_s30 + $0xf8] sm:$0xff]  }
  0x24   : > { %1091 = vmatprep.mubr.msk.bf16.mxu1 %vm405_vm2, %v1168_v14 }
  0x2a   : > { %1060 = vmatmul.mubr.msk.bf16.gmra.mrb[8].mxu0 %vm405_vm2, %v1169_v15 }
  0x2b   : > { %1092 = vmatmul.mubr.msk.bf16.gmra.mrb[8].mxu1 %vm405_vm2, %v1170_v16  ;;  %1063 = vmatprep.mubr.msk.bf16.mxu0 %vm405_vm2, %v1171_v17 }
  0x2c   : > { %1095 = vmatprep.mubr.msk.bf16.mxu1 %vm405_vm2, %v1172_v18 }
  0x32   : > { %1064 = vmatmul.mubr.msk.bf16.gmra.mrb[12].mxu0 %vm405_vm2, %v1173_v19 }
  0x33   : > { %1096 = vmatmul.mubr.msk.bf16.gmra.mrb[12].mxu1 %vm405_vm2, %v1174_v20  ;;  %1067 = vmatprep.mubr.msk.bf16.mxu0 %vm405_vm2, %v1175_v21 }
  0x34   : > { %1099 = vmatprep.mubr.msk.bf16.mxu1 %vm405_vm2, %v1176_v22 }
  0x3a   : > { %1068 = vmatmul.mubr.msk.bf16.gmra.mrb[16].mxu0 %vm405_vm2, %v1177_v23 }
  0x3b   : > { %1100 = vmatmul.mubr.msk.bf16.gmra.mrb[16].mxu1 %vm405_vm2, %v1178_v24  ;;  %1071 = vmatprep.mubr.msk.bf16.mxu0 %vm405_vm2, %v1179_v25 }
  0x3c   : > { %1103 = vmatprep.mubr.msk.bf16.mxu1 %vm405_vm2, %v1180_v26 }
  0x42   : > { %1072 = vmatmul.mubr.msk.bf16.gmra.mrb[20].mxu0 %vm405_vm2, %v1181_v27 }
  0x43   : > { %1104 = vmatmul.mubr.msk.bf16.gmra.mrb[20].mxu1 %vm405_vm2, %v1182_v28  ;;  %1075 = vmatprep.mubr.msk.bf16.mxu0 %vm405_vm2, %v1183_v29 }
  0x44   : > { %1107 = vmatprep.mubr.msk.bf16.mxu1 %vm405_vm2, %v1184_v30 }
  0x4a   : > { %1076 = vmatmul.mubr.msk.bf16.gmra.mrb[24].mxu0 %vm405_vm2, %v1185_v31 }
  0x4b   : > { %1108 = vmatmul.mubr.msk.bf16.gmra.mrb[24].mxu1 %vm405_vm2, %v1186_v32  ;;  %1079 = vmatprep.mubr.msk.bf16.mxu0 %vm405_vm2, %v1187_v33 }
  0x4c   : > { %1111 = vmatprep.mubr.msk.bf16.mxu1 %vm405_vm2, %v1188_v34 }
  0x52   : > { %1080 = vmatmul.mubr.msk.bf16.gmra.mrb[28].mxu0 %vm405_vm2, %v1189_v35 }
  0x53   : > { %1112 = vmatmul.mubr.msk.bf16.gmra.mrb[28].mxu1 %vm405_vm2, %v1190_v36 }
  0xed   : > { %v1053_v38 = vpop.f32.mrb[0].mxu0 }
  0xee   : > { %v552_v39 = vadd.f32 %v1053_v38, %v1406_v37  ;;  %v1085_v40 = vpop.f32.mrb[0].mxu1  ;;  %v543_v41 = vpop.f32.mrb[1].mxu0 }
  0xef   : > { %v680_v42 = vadd.f32 %v1085_v40, %v1406_v37  ;;  %v544_v43 = vadd.f32 %v1406_v37, %v543_v41  ;;  %v671_v44 = vpop.f32.mrb[1].mxu1  ;;  %v1054_v45 = vpop.f32.mrb[2].mxu0 }
  0xf0   : > { %800 = vst [vmem:[%s1411_s8 + $0x10] sm:$0xff] %v552_v39  ;;  %v672_v46 = vadd.f32 %v1406_v37, %v671_v44  ;;  %v555_v47 = vadd.f32 %v1054_v45, %v1406_v37  ;;  %v1086_v48 = vpop.f32.mrb[2].mxu1  ;;  %v546_v49 = vpop.f32.mrb[3].mxu0 }
  0xf1   : > { %832 = vst [vmem:[%s1411_s8 + $0x110] sm:$0xff] %v680_v42  ;;  %798 = vst [vmem:[%s1411_s8] sm:$0xff] %v544_v43  ;;  %v683_v50 = vadd.f32 %v1086_v48, %v1406_v37  ;;  %v547_v51 = vadd.f32 %v1406_v37, %v546_v49  ;;  %v674_v52 = vpop.f32.mrb[3].mxu1 }
  0xf2   : > { %830 = vst [vmem:[%s1411_s8 + $0x100] sm:$0xff] %v672_v46  ;;  %801 = vst [vmem:[%s1411_s8 + $0x18] sm:$0xff] %v555_v47  ;;  %v675_v53 = vadd.f32 %v1406_v37, %v674_v52 }
  0xf3   : > { %833 = vst [vmem:[%s1411_s8 + $0x118] sm:$0xff] %v683_v50  ;;  %799 = vst [vmem:[%s1411_s8 + $0x8] sm:$0xff] %v547_v51 }
  0xf4   : > { %831 = vst [vmem:[%s1411_s8 + $0x108] sm:$0xff] %v675_v53 }
  0xf5   : > { %v1057_v54 = vpop.f32.mrb[4].mxu0 }
  0xf6   : > { %v568_v55 = vadd.f32 %v1057_v54, %v1406_v37  ;;  %v1089_v56 = vpop.f32.mrb[4].mxu1  ;;  %v559_v57 = vpop.f32.mrb[5].mxu0 }
  0xf7   : > { %v696_v58 = vadd.f32 %v1089_v56, %v1406_v37  ;;  %v560_v59 = vadd.f32 %v1406_v37, %v559_v57  ;;  %v687_v60 = vpop.f32.mrb[5].mxu1  ;;  %v1058_v61 = vpop.f32.mrb[6].mxu0 }
  0xf8   : > { %804 = vst [vmem:[%s1411_s8 + $0x30] sm:$0xff] %v568_v55  ;;  %v688_v62 = vadd.f32 %v1406_v37, %v687_v60  ;;  %v571_v63 = vadd.f32 %v1058_v61, %v1406_v37  ;;  %v1090_v0 = vpop.f32.mrb[6].mxu1  ;;  %v562_v1 = vpop.f32.mrb[7].mxu0 }
  0xf9   : > { %836 = vst [vmem:[%s1411_s8 + $0x130] sm:$0xff] %v696_v58  ;;  %802 = vst [vmem:[%s1411_s8 + $0x20] sm:$0xff] %v560_v59  ;;  %v699_v2 = vadd.f32 %v1090_v0, %v1406_v37  ;;  %v563_v3 = vadd.f32 %v1406_v37, %v562_v1  ;;  %v690_v4 = vpop.f32.mrb[7].mxu1 }
  0xfa   : > { %834 = vst [vmem:[%s1411_s8 + $0x120] sm:$0xff] %v688_v62  ;;  %805 = vst [vmem:[%s1411_s8 + $0x38] sm:$0xff] %v571_v63  ;;  %v691_v5 = vadd.f32 %v1406_v37, %v690_v4 }
  0xfb   : > { %837 = vst [vmem:[%s1411_s8 + $0x138] sm:$0xff] %v699_v2  ;;  %803 = vst [vmem:[%s1411_s8 + $0x28] sm:$0xff] %v563_v3 }
  0xfc   : > { %835 = vst [vmem:[%s1411_s8 + $0x128] sm:$0xff] %v691_v5 }
  0xfd   : > { %v1061_v6 = vpop.f32.mrb[8].mxu0 }
  0xfe   : > { %v584_v7 = vadd.f32 %v1061_v6, %v1406_v37  ;;  %v1093_v8 = vpop.f32.mrb[8].mxu1  ;;  %v575_v9 = vpop.f32.mrb[9].mxu0 }
  0xff   : > { %v712_v10 = vadd.f32 %v1093_v8, %v1406_v37  ;;  %v576_v11 = vadd.f32 %v1406_v37, %v575_v9  ;;  %v703_v12 = vpop.f32.mrb[9].mxu1  ;;  %v1062_v13 = vpop.f32.mrb[10].mxu0 }
 0x100   : > { %808 = vst [vmem:[%s1411_s8 + $0x50] sm:$0xff] %v584_v7  ;;  %v704_v14 = vadd.f32 %v1406_v37, %v703_v12  ;;  %v587_v15 = vadd.f32 %v1062_v13, %v1406_v37  ;;  %v1094_v16 = vpop.f32.mrb[10].mxu1  ;;  %v578_v17 = vpop.f32.mrb[11].mxu0 }
 0x101   : > { %840 = vst [vmem:[%s1411_s8 + $0x150] sm:$0xff] %v712_v10  ;;  %806 = vst [vmem:[%s1411_s8 + $0x40] sm:$0xff] %v576_v11  ;;  %v715_v18 = vadd.f32 %v1094_v16, %v1406_v37  ;;  %v579_v19 = vadd.f32 %v1406_v37, %v578_v17  ;;  %v706_v20 = vpop.f32.mrb[11].mxu1 }
 0x102   : > { %838 = vst [vmem:[%s1411_s8 + $0x140] sm:$0xff] %v704_v14  ;;  %809 = vst [vmem:[%s1411_s8 + $0x58] sm:$0xff] %v587_v15  ;;  %v707_v21 = vadd.f32 %v1406_v37, %v706_v20 }
 0x103   : > { %841 = vst [vmem:[%s1411_s8 + $0x158] sm:$0xff] %v715_v18  ;;  %807 = vst [vmem:[%s1411_s8 + $0x48] sm:$0xff] %v579_v19 }
 0x104   : > { %839 = vst [vmem:[%s1411_s8 + $0x148] sm:$0xff] %v707_v21 }
 0x105   : > { %v1065_v22 = vpop.f32.mrb[12].mxu0 }
 0x106   : > { %v600_v23 = vadd.f32 %v1065_v22, %v1406_v37  ;;  %v1097_v24 = vpop.f32.mrb[12].mxu1  ;;  %v591_v25 = vpop.f32.mrb[13].mxu0 }
 0x107   : > { %v728_v26 = vadd.f32 %v1097_v24, %v1406_v37  ;;  %v592_v27 = vadd.f32 %v1406_v37, %v591_v25  ;;  %v719_v28 = vpop.f32.mrb[13].mxu1  ;;  %v1066_v29 = vpop.f32.mrb[14].mxu0 }
 0x108   : > { %812 = vst [vmem:[%s1411_s8 + $0x70] sm:$0xff] %v600_v23  ;;  %v720_v30 = vadd.f32 %v1406_v37, %v719_v28  ;;  %v603_v31 = vadd.f32 %v1066_v29, %v1406_v37  ;;  %v1098_v32 = vpop.f32.mrb[14].mxu1  ;;  %v594_v33 = vpop.f32.mrb[15].mxu0 }
 0x109   : > { %844 = vst [vmem:[%s1411_s8 + $0x170] sm:$0xff] %v728_v26  ;;  %810 = vst [vmem:[%s1411_s8 + $0x60] sm:$0xff] %v592_v27  ;;  %v731_v34 = vadd.f32 %v1098_v32, %v1406_v37  ;;  %v595_v35 = vadd.f32 %v1406_v37, %v594_v33  ;;  %v722_v36 = vpop.f32.mrb[15].mxu1 }
 0x10a   : > { %842 = vst [vmem:[%s1411_s8 + $0x160] sm:$0xff] %v720_v30  ;;  %813 = vst [vmem:[%s1411_s8 + $0x78] sm:$0xff] %v603_v31  ;;  %v723_v38 = vadd.f32 %v1406_v37, %v722_v36 }
 0x10b   : > { %845 = vst [vmem:[%s1411_s8 + $0x178] sm:$0xff] %v731_v34  ;;  %811 = vst [vmem:[%s1411_s8 + $0x68] sm:$0xff] %v595_v35 }
 0x10c   : > { %843 = vst [vmem:[%s1411_s8 + $0x168] sm:$0xff] %v723_v38 }
 0x10d   : > { %v1069_v39 = vpop.f32.mrb[16].mxu0 }
 0x10e   : > { %v616_v40 = vadd.f32 %v1069_v39, %v1406_v37  ;;  %v1101_v41 = vpop.f32.mrb[16].mxu1  ;;  %v607_v42 = vpop.f32.mrb[17].mxu0 }
 0x10f   : > { %v744_v43 = vadd.f32 %v1101_v41, %v1406_v37  ;;  %v608_v44 = vadd.f32 %v1406_v37, %v607_v42  ;;  %v735_v45 = vpop.f32.mrb[17].mxu1  ;;  %v1070_v46 = vpop.f32.mrb[18].mxu0 }
 0x110   : > { %816 = vst [vmem:[%s1411_s8 + $0x90] sm:$0xff] %v616_v40  ;;  %v736_v47 = vadd.f32 %v1406_v37, %v735_v45  ;;  %v619_v48 = vadd.f32 %v1070_v46, %v1406_v37  ;;  %v1102_v49 = vpop.f32.mrb[18].mxu1  ;;  %v610_v50 = vpop.f32.mrb[19].mxu0 }
 0x111   : > { %848 = vst [vmem:[%s1411_s8 + $0x190] sm:$0xff] %v744_v43  ;;  %814 = vst [vmem:[%s1411_s8 + $0x80] sm:$0xff] %v608_v44  ;;  %v747_v51 = vadd.f32 %v1102_v49, %v1406_v37  ;;  %v611_v52 = vadd.f32 %v1406_v37, %v610_v50  ;;  %v738_v53 = vpop.f32.mrb[19].mxu1 }
 0x112   : > { %846 = vst [vmem:[%s1411_s8 + $0x180] sm:$0xff] %v736_v47  ;;  %817 = vst [vmem:[%s1411_s8 + $0x98] sm:$0xff] %v619_v48  ;;  %v739_v54 = vadd.f32 %v1406_v37, %v738_v53 }
 0x113   : > { %849 = vst [vmem:[%s1411_s8 + $0x198] sm:$0xff] %v747_v51  ;;  %815 = vst [vmem:[%s1411_s8 + $0x88] sm:$0xff] %v611_v52 }
 0x114   : > { %847 = vst [vmem:[%s1411_s8 + $0x188] sm:$0xff] %v739_v54 }
 0x115   : > { %v1073_v55 = vpop.f32.mrb[20].mxu0 }
 0x116   : > { %v632_v56 = vadd.f32 %v1073_v55, %v1406_v37  ;;  %v1105_v57 = vpop.f32.mrb[20].mxu1  ;;  %v623_v58 = vpop.f32.mrb[21].mxu0 }
 0x117   : > { %v760_v59 = vadd.f32 %v1105_v57, %v1406_v37  ;;  %v624_v60 = vadd.f32 %v1406_v37, %v623_v58  ;;  %v751_v61 = vpop.f32.mrb[21].mxu1  ;;  %v1074_v62 = vpop.f32.mrb[22].mxu0 }
 0x118   : > { %820 = vst [vmem:[%s1411_s8 + $0xb0] sm:$0xff] %v632_v56  ;;  %v752_v63 = vadd.f32 %v1406_v37, %v751_v61  ;;  %v635_v0 = vadd.f32 %v1074_v62, %v1406_v37  ;;  %v1106_v1 = vpop.f32.mrb[22].mxu1  ;;  %v626_v2 = vpop.f32.mrb[23].mxu0 }
 0x119   : > { %852 = vst [vmem:[%s1411_s8 + $0x1b0] sm:$0xff] %v760_v59  ;;  %818 = vst [vmem:[%s1411_s8 + $0xa0] sm:$0xff] %v624_v60  ;;  %v763_v3 = vadd.f32 %v1106_v1, %v1406_v37  ;;  %v627_v4 = vadd.f32 %v1406_v37, %v626_v2  ;;  %v754_v5 = vpop.f32.mrb[23].mxu1 }
 0x11a   : > { %850 = vst [vmem:[%s1411_s8 + $0x1a0] sm:$0xff] %v752_v63  ;;  %821 = vst [vmem:[%s1411_s8 + $0xb8] sm:$0xff] %v635_v0  ;;  %v755_v6 = vadd.f32 %v1406_v37, %v754_v5 }
 0x11b   : > { %853 = vst [vmem:[%s1411_s8 + $0x1b8] sm:$0xff] %v763_v3  ;;  %819 = vst [vmem:[%s1411_s8 + $0xa8] sm:$0xff] %v627_v4 }
 0x11c   : > { %851 = vst [vmem:[%s1411_s8 + $0x1a8] sm:$0xff] %v755_v6 }
 0x11d   : > { %v1077_v7 = vpop.f32.mrb[24].mxu0 }
 0x11e   : > { %v648_v8 = vadd.f32 %v1077_v7, %v1406_v37  ;;  %v1109_v9 = vpop.f32.mrb[24].mxu1  ;;  %v639_v10 = vpop.f32.mrb[25].mxu0 }
 0x11f   : > { %v776_v11 = vadd.f32 %v1109_v9, %v1406_v37  ;;  %v640_v12 = vadd.f32 %v1406_v37, %v639_v10  ;;  %v767_v13 = vpop.f32.mrb[25].mxu1  ;;  %v1078_v14 = vpop.f32.mrb[26].mxu0 }
 0x120   : > { %824 = vst [vmem:[%s1411_s8 + $0xd0] sm:$0xff] %v648_v8  ;;  %v768_v15 = vadd.f32 %v1406_v37, %v767_v13  ;;  %v651_v16 = vadd.f32 %v1078_v14, %v1406_v37  ;;  %v1110_v17 = vpop.f32.mrb[26].mxu1  ;;  %v642_v18 = vpop.f32.mrb[27].mxu0 }
 0x121   : > { %856 = vst [vmem:[%s1411_s8 + $0x1d0] sm:$0xff] %v776_v11  ;;  %822 = vst [vmem:[%s1411_s8 + $0xc0] sm:$0xff] %v640_v12  ;;  %v779_v19 = vadd.f32 %v1110_v17, %v1406_v37  ;;  %v643_v20 = vadd.f32 %v1406_v37, %v642_v18  ;;  %v770_v21 = vpop.f32.mrb[27].mxu1 }
 0x122   : > { %854 = vst [vmem:[%s1411_s8 + $0x1c0] sm:$0xff] %v768_v15  ;;  %825 = vst [vmem:[%s1411_s8 + $0xd8] sm:$0xff] %v651_v16  ;;  %v771_v22 = vadd.f32 %v1406_v37, %v770_v21 }
 0x123   : > { %857 = vst [vmem:[%s1411_s8 + $0x1d8] sm:$0xff] %v779_v19  ;;  %823 = vst [vmem:[%s1411_s8 + $0xc8] sm:$0xff] %v643_v20 }
 0x124   : > { %855 = vst [vmem:[%s1411_s8 + $0x1c8] sm:$0xff] %v771_v22 }
 0x125   : > { %v1081_v23 = vpop.f32.mrb[28].mxu0 }
 0x126   : > { %v664_v24 = vadd.f32 %v1081_v23, %v1406_v37  ;;  %v1113_v25 = vpop.f32.mrb[28].mxu1  ;;  %v655_v26 = vpop.f32.mrb[29].mxu0 }
 0x127   : > { %v792_v27 = vadd.f32 %v1113_v25, %v1406_v37  ;;  %v656_v28 = vadd.f32 %v1406_v37, %v655_v26  ;;  %v783_v29 = vpop.f32.mrb[29].mxu1  ;;  %v1082_v30 = vpop.f32.mrb[30].mxu0 }
 0x128   : > { %828 = vst [vmem:[%s1411_s8 + $0xf0] sm:$0xff] %v664_v24  ;;  %v784_v31 = vadd.f32 %v1406_v37, %v783_v29  ;;  %v667_v32 = vadd.f32 %v1082_v30, %v1406_v37  ;;  %v1114_v33 = vpop.f32.mrb[30].mxu1  ;;  %v658_v34 = vpop.f32.mrb[31].mxu0 }
 0x129   : > { %860 = vst [vmem:[%s1411_s8 + $0x1f0] sm:$0xff] %v792_v27  ;;  %826 = vst [vmem:[%s1411_s8 + $0xe0] sm:$0xff] %v656_v28  ;;  %v795_v35 = vadd.f32 %v1114_v33, %v1406_v37  ;;  %v659_v36 = vadd.f32 %v1406_v37, %v658_v34  ;;  %v786_v38 = vpop.f32.mrb[31].mxu1 }
 0x12a   : > { %858 = vst [vmem:[%s1411_s8 + $0x1e0] sm:$0xff] %v784_v31  ;;  %829 = vst [vmem:[%s1411_s8 + $0xf8] sm:$0xff] %v667_v32  ;;  %v787_v39 = vadd.f32 %v1406_v37, %v786_v38 }
 0x12b   : > { %861 = vst [vmem:[%s1411_s8 + $0x1f8] sm:$0xff] %v795_v35  ;;  %827 = vst [vmem:[%s1411_s8 + $0xe8] sm:$0xff] %v659_v36 }
 0x12c   : > { %859 = vst [vmem:[%s1411_s8 + $0x1e8] sm:$0xff] %v787_v39 }
 0x12d   : > { %1204 = shalt.err (!%p1201_p3)
}
 0x12e   : > { %s1205_s27 = scalar_lea.hbm %s1537_s17, 8192  ;;  %s1209_s30 = scalar_lea.hbm %s1593_s3, 32768 }
 0x12f   : > { %p1206_p4 = scmp.ne.s32.totalorder %s1537_s17, %s1205_s27  ;;  %p1210_p9 = scmp.lt.u32.totalorder %s1537_s17, %s1593_s3 }
 0x130   : > { %p1211_p10 = scmp.lt.u32.totalorder %s1209_s30, %s1205_s27  ;;  %p1213_p12 = scmp.lt.u32.totalorder %s1205_s27, %s1537_s17 }
 0x131   : > { %p1207_p7 = pnand %p1206_p4, %p1317_p5 }
 0x132   : > { %p1212_p11 = por %p1211_p10, %p1210_p9 }
 0x133   : > { %p1208_p8 = pneg %p1207_p7 }
 0x134   : > { %p1214_p13 = por %p1213_p12, %p1212_p11 }
 0x136   : > { %p1215_p0 = pnand %p1214_p13, %p1208_p8 }
 0x138   : > { %1218 = shalt.err (!%p1215_p0)
}
 0x139   : > { %s1257_s6 = smov 128   ;;  %s1258_s7 = smov 8  }
 0x13a   : > { %1117 = dma.vmem_to_hbm [thread:$0]  (%p1317_p5), %s1539_s10, 8192, %s1537_s17, %s1549_s19, %s1257_s6, %s1257_s6, %s1258_s7  }
 0x13b PF: > { %p1123_p1 = scmp.ge.s32.totalorder %s1253_s15, 2  ;;  %s891_s8 = sand.u32 1, %s1241_s12  }
 0x13c   : > { %s892_s9 = scalar_lea.sflag [#allocation3], %s891_s8 }
 0x13d   : > { %p1120_p2 = pnand %p1123_p1, %p1321_p6 }
 0x13f   : > { %1236 = dma.done.wait (!%p1120_p2), %s892_s9, 8192  }
 0x140   : > { %1238 = vsyncadd (!%p1120_p2), %s892_s9, 4294959104  ;;  %p13_p3 = scmp.ge.s32.totalorder %s1304_s18, 6   ;;  %s1596_s12 = smov %s1245_s13 }
 0x141   : > { %s1597_s13 = smov %s1249_s14  ;;  %s1598_s14 = smov %s1315_s21 }
 0x142   : > { %s1599_s15 = smov %s1304_s18  ;;  %15 = sbr.rel (!%p13_p3) target bundleno = 3 (0x3), region = 67 }
 0x149   :  { %897 = vsyncpa [#allocation3], 1 }
 0x14a   :  { %899 = vsyncpa [#allocation3 + $0x1], 1 }

</bundles_post_ra>
